<compile_context>
chip_gen: v7x
topology: tpu7x:2x2x1
jax: 0.10.0
libtpu: 0.0.40
codegen_flags: <defaults>
</compile_context>

<pallas_src>
import functools

import jax
import jax.numpy as jnp
from jax import lax
from jax.experimental import pallas as pl
from jax.experimental.pallas import tpu as pltpu

_EPS = 1e-6       # F.pairwise_distance default eps (added to the difference vector)
_NEG_BIG = -1e30  # sentinel for padded columns: forces clamped distance == 0


def _round_up(x, m):
    return ((x + m - 1) // m) * m


def _silhouette_kernel(x_ref, lrow_ref, cnt_ref, y_ref, lcol_ref, yn_ref,
                       out_ref, sintra_sc, sall_sc, *, n_valid):
    """Grid: (row tiles i [parallel], column tiles k [arbitrary reduction]).

    x_ref    : (TM, D)     row tile of embeddings (query rows)
    lrow_ref : (TM, 1)     int32 labels of the row tile
    cnt_ref  : (TM, 1)     f32 hoisted same-label counts (incl. self)
    y_ref    : (TN, D)     column tile of embeddings (key rows)
    lcol_ref : (1, TN)     int32 labels of the column tile
    yn_ref   : (1, TN)     hoisted ||y||^2 - 2*eps*sum(y); -1e30 on padded cols
    out_ref  : (1, 8, 128) per-row-tile partial sum of (1 + s_i), lane padded
    sintra_sc / sall_sc : (TM, 1) f32 accumulators across k
    """
    i = pl.program_id(0)
    k = pl.program_id(1)

    @pl.when(k == 0)
    def _init():
        sintra_sc[...] = jnp.zeros_like(sintra_sc)
        sall_sc[...] = jnp.zeros_like(sall_sc)

    x = x_ref[...]                       # (TM, D) f32
    y = y_ref[...]                       # (TN, D) f32
    lr = lrow_ref[...]                   # (TM, 1) i32
    lc = lcol_ref[...]                   # (1, TN) i32
    yn = yn_ref[...]                     # (1, TN) f32

    tm, d = x.shape

    # Cheap row-tile constants (O(TM*D)); eps terms folded here and in yn.
    xn = jnp.sum(x * x, axis=-1, keepdims=True)                       # (TM, 1)
    xs = jnp.sum(x, axis=-1, keepdims=True)                           # (TM, 1)
    row_const = xn + (2.0 * _EPS) * xs + d * (_EPS * _EPS)            # (TM, 1)

    # ||x_i - y_j + eps||^2 = row_const_i + yn_adj_j - 2 x.y
    xy = lax.dot_general(x, y, (((1,), (1,)), ((), ())),
                         preferred_element_type=jnp.float32)          # (TM, TN)
    d2 = row_const + yn - 2.0 * xy
    dist = jnp.sqrt(jnp.maximum(d2, 0.0))                             # 0 on padded cols

    # sum of all distances and of same-label distances; inter = all - intra.
    sall_sc[...] += jnp.sum(dist, axis=-1, keepdims=True)
    sintra_sc[...] += jnp.sum(jnp.where(lr == lc, dist, 0.0),
                              axis=-1, keepdims=True)

    @pl.when(k == pl.num_programs(1) - 1)
    def _finalize():
        cnt = cnt_ref[...]                                            # (TM, 1)
        s_intra = sintra_sc[...]
        s_all = sall_sc[...]

        # a: mean intra-cluster distance (0 when the point is alone in its
        #    cluster, matching the skipped assignment in the PyTorch loop).
        a = jnp.where(cnt > 1.0, s_intra / jnp.maximum(cnt, 1.0), 0.0)
        # b: mean distance to every point NOT in the cluster (+inf if none;
        #    the single-cluster edge case then yields NaN, as in the reference).
        n_other = jnp.float32(n_valid) - cnt
        b = jnp.where(n_other > 0.0,
                      (s_all - s_intra) / jnp.maximum(n_other, 1.0),
                      jnp.inf)
        s = (b - a) / jnp.maximum(a, b)                               # (TM, 1)

        row_ids = i * tm + lax.broadcasted_iota(jnp.int32, (tm, 1), 0)
        contrib = jnp.where(row_ids < n_valid, 1.0 + s, 0.0)          # (TM, 1)
        out_ref[...] = jnp.broadcast_to(jnp.sum(contrib), out_ref.shape)


def _device_kind():
    try:
        return jax.devices()[0].device_kind.lower()
    except Exception:
        return ""


def _vmem_estimate(tm, tn, d):
    """Bytes: double-buffered blocks + scratch + ~4 live (TM,TN) f32 temps."""
    blocks = 2 * (tm * d * 4            # x tile
                  + 2 * tm * 128 * 4    # row labels + row counts (lane padded)
                  + tn * d * 4          # y tile
                  + 2 * 8 * tn * 4      # column labels + yn_adj (sublane padded)
                  + 8 * 128 * 4)        # output tile
    scratch = 2 * tm * 128 * 4
    temps = 4 * tm * tn * 4
    return blocks + scratch + temps


def _pick_config(n, d, tile_m, tile_n):
    kind = _device_kind()
    is_v7 = "v7" in kind
    big_vmem = (("v5" in kind) or ("v6" in kind)) and not is_v7
    if big_vmem:
        cap = 100 * 2**20                    # v5e/v6e: 128 MiB physical VMEM
        def_tm = 512
        def_tn = 2048 if d <= 256 else 1024
    else:
        cap = 52 * 2**20                     # v7x (64 MiB/TC) or unknown: headroom
        def_tm = 256
        def_tn = 1024

    tm = tile_m if tile_m is not None else def_tm
    tn = tile_n if tile_n is not None else def_tn
    tm = min(_round_up(max(tm, 8), 8), _round_up(n, 8))
    tn = min(_round_up(max(tn, 128), 128), _round_up(n, 128))

    # v7x: the "parallel" row axis is sharded across 2 TensorCores — make sure
    # there are at least 2 balanced row tiles whenever n allows it.
    if is_v7:
        tm = min(tm, max(8, _round_up((n + 1) // 2, 8)))

    budget = int(0.8 * cap)
    for _ in range(16):
        if _vmem_estimate(tm, tn, d) <= budget:
            break
        if tn > 128:
            tn = max(128, ((tn // 2) // 128) * 128)
        elif tm > 8:
            tm = max(8, ((tm // 2) // 8) * 8)
        else:
            break

    vmem_limit = int(min(cap, max(32 * 2**20, 2 * _vmem_estimate(tm, tn, d))))
    return tm, tn, vmem_limit


def silhouette_loss(embeddings, cluster_labels, *, tile_m=None, tile_n=None):
    """Pallas TPU implementation of SilhouetteLoss.forward."""
    emb = embeddings.astype(jnp.float32)
    n, d = emb.shape
    lbl = cluster_labels.astype(jnp.int32).reshape(n)

    tm, tn, vmem_limit = _pick_config(n, d, tile_m, tile_n)
    n_rows = _round_up(n, tm)
    n_cols = _round_up(n, tn)
    n_row_tiles = n_rows // tm
    n_col_tiles = n_cols // tn

    # One padded embedding copy feeds both the row-tile and column-tile specs.
    n_pad = max(n_rows, n_cols)
    emb_p = jnp.pad(emb, ((0, n_pad - n), (0, 0)))

    # Row-side small operands.
    lbl_r = jnp.pad(lbl, (0, n_rows - n), constant_values=-1).reshape(n_rows, 1)
    # Hoisted per-row same-label counts (includes self), O(N log N) in the wrapper.
    _, inv = jnp.unique(lbl, return_inverse=True, size=n)
    per_cluster = jax.ops.segment_sum(jnp.ones((n,), jnp.float32), inv,
                                      num_segments=n)
    cnt = per_cluster[inv]
    cnt_r = jnp.pad(cnt, (0, n_rows - n), constant_values=1.0).reshape(n_rows, 1)

    # Column-side small operands (grid-invariant, hoisted).
    lbl_c = jnp.pad(lbl, (0, n_cols - n), constant_values=-1).reshape(1, n_cols)
    yn_adj = jnp.sum(emb * emb, axis=-1) - (2.0 * _EPS) * jnp.sum(emb, axis=-1)
    yn_c = jnp.pad(yn_adj, (0, n_cols - n),
                   constant_values=_NEG_BIG).reshape(1, n_cols)

    kernel = functools.partial(_silhouette_kernel, n_valid=n)

    out = pl.pallas_call(
        kernel,
        out_shape=jax.ShapeDtypeStruct((n_row_tiles, 8, 128), jnp.float32),
        grid_spec=pltpu.PrefetchScalarGridSpec(
            num_scalar_prefetch=0,
            grid=(n_row_tiles, n_col_tiles),
            in_specs=[
                pl.BlockSpec((tm, d), lambda i, k: (i, 0)),    # row tile of embeddings
                pl.BlockSpec((tm, 1), lambda i, k: (i, 0)),    # row-tile labels
                pl.BlockSpec((tm, 1), lambda i, k: (i, 0)),    # hoisted same-label counts
                pl.BlockSpec((tn, d), lambda i, k: (k, 0)),    # column tile of embeddings
                pl.BlockSpec((1, tn), lambda i, k: (0, k)),    # column labels
                pl.BlockSpec((1, tn), lambda i, k: (0, k)),    # hoisted ||y||^2 - 2*eps*sum(y)
            ],
            out_specs=pl.BlockSpec((1, 8, 128), lambda i, k: (i, 0, 0)),
            scratch_shapes=[pltpu.VMEM((tm, 1), jnp.float32)] * 2,
        ),
        compiler_params=pltpu.CompilerParams(
            dimension_semantics=("parallel", "arbitrary"),
            vmem_limit_bytes=vmem_limit,
        ),
    )(emb_p, lbl_r, cnt_r, emb_p, lbl_c, yn_c)

    partials = out[:, 0, 0]                                           # (n_row_tiles,)
    return 1.0 - jnp.sum(partials) / jnp.float32(n)


def reference_loss(embeddings, cluster_labels):
    """Plain-JAX reference reproducing the PyTorch semantics (for self-check)."""
    emb = embeddings.astype(jnp.float32)
    lbl = cluster_labels.astype(jnp.int32)
    n = emb.shape[0]
    diff = emb[:, None, :] - emb[None, :, :] + _EPS
    dist = jnp.sqrt(jnp.sum(diff * diff, axis=-1))
    same = lbl[:, None] == lbl[None, :]
    cnt = jnp.sum(same, axis=1).astype(jnp.float32)
    sum_intra = jnp.sum(jnp.where(same, dist, 0.0), axis=1)
    sum_inter = jnp.sum(jnp.where(same, 0.0, dist), axis=1)
    a = jnp.where(cnt > 1.0, sum_intra / jnp.maximum(cnt, 1.0), 0.0)
    n_other = n - cnt
    b = jnp.where(n_other > 0.0, sum_inter / jnp.maximum(n_other, 1.0), jnp.inf)
    s = (b - a) / jnp.maximum(a, b)
    return 1.0 - jnp.mean(1.0 + s)


if __name__ == "__main__":
    key = jax.random.PRNGKey(0)
    k1, k2, k3, k4 = jax.random.split(key, 4)

    # Small case (default, generation-derived tiling).
    n1, d1, c1 = 16, 32, 3
    emb1 = jax.random.normal(k1, (n1, d1), jnp.float32)
    lbl1 = jax.random.randint(k2, (n1,), 0, c1, jnp.int32)
    loss1 = silhouette_loss(emb1, lbl1)
    jax.block_until_ready(loss1)
    ref1 = reference_loss(emb1, lbl1)
    assert abs(float(loss1) - float(ref1)) < 2e-3, (float(loss1), float(ref1))

    # Multi-tile case exercising row/column padding, the reduction axis and the
    # parallel row-tile axis.
    n2, d2, c2 = 200, 16, 5
    emb2 = jax.random.normal(k3, (n2, d2), jnp.float32)
    lbl2 = jax.random.randint(k4, (n2,), 0, c2, jnp.int32)
    loss2 = silhouette_loss(emb2, lbl2, tile_m=64, tile_n=128)
    jax.block_until_ready(loss2)
    ref2 = reference_loss(emb2, lbl2)
    assert abs(float(loss2) - float(ref2)) < 2e-3, (float(loss2), float(ref2))

    print("KERNEL_OK")
</pallas_src>

<mosaic_0001>
module attributes {stable_mosaic.version = 11 : i64} {
  func.func @_silhouette_kernel(%arg0: i32, %arg1: i32, %arg2: memref<16x32xf32, #tpu.memory_space<vmem>>, %arg3: memref<16x1xi32, #tpu.memory_space<vmem>>, %arg4: memref<16x1xf32, #tpu.memory_space<vmem>>, %arg5: memref<128x32xf32, #tpu.memory_space<vmem>>, %arg6: memref<1x128xi32, #tpu.memory_space<vmem>>, %arg7: memref<1x128xf32, #tpu.memory_space<vmem>>, %arg8: memref<1x8x128xf32, #tpu.memory_space<vmem>>, %arg9: memref<16x1xf32, #tpu.memory_space<vmem>>, %arg10: memref<16x1xf32, #tpu.memory_space<vmem>>) attributes {dimension_semantics = [#tpu.dimension_semantics<parallel>, #tpu.dimension_semantics<arbitrary>], iteration_bounds = array<i64: 1, 1>, scalar_prefetch = 0 : i64, scratch_operands = 2 : i64, tpu.core_type = #tpu.core_type<tc>, window_params = [{transform_indices = @transform_0, window_bounds = array<i64: 16, 32>}, {transform_indices = @transform_1, window_bounds = array<i64: 16, 1>}, {transform_indices = @transform_2, window_bounds = array<i64: 16, 1>}, {transform_indices = @transform_3, window_bounds = array<i64: 128, 32>}, {transform_indices = @transform_4, window_bounds = array<i64: 1, 128>}, {transform_indices = @transform_5, window_bounds = array<i64: 1, 128>}, {transform_indices = @transform_6, window_bounds = array<i64: 1, 8, 128>}]} {
    %c0_i32 = arith.constant 0 : i32
    %0 = arith.cmpi eq, %arg1, %c0_i32 : i32
    %1 = arith.extui %0 : i1 to i32
    %c0_i32_0 = arith.constant 0 : i32
    %2 = arith.cmpi ne, %1, %c0_i32_0 : i32
    scf.if %2 {
      %cst_29 = arith.constant 0.000000e+00 : f32
      %46 = vector.broadcast %cst_29 : f32 to vector<16x1xf32>
      %c0_30 = arith.constant 0 : index
      %c0_31 = arith.constant 0 : index
      %47 = vector.load %arg9[%c0_30, %c0_31] : memref<16x1xf32, #tpu.memory_space<vmem>>, vector<16x1xf32>
      tpu.vector_store %arg9[%c0_30, %c0_31], %46 {strides = array<i32>} : memref<16x1xf32, #tpu.memory_space<vmem>>, vector<16x1xf32>,
      %cst_32 = arith.constant 0.000000e+00 : f32
      %48 = vector.broadcast %cst_32 : f32 to vector<16x1xf32>
      %c0_33 = arith.constant 0 : index
      %c0_34 = arith.constant 0 : index
      %49 = vector.load %arg10[%c0_33, %c0_34] : memref<16x1xf32, #tpu.memory_space<vmem>>, vector<16x1xf32>
      tpu.vector_store %arg10[%c0_33, %c0_34], %48 {strides = array<i32>} : memref<16x1xf32, #tpu.memory_space<vmem>>, vector<16x1xf32>,
    } else {
    }
    %c0 = arith.constant 0 : index
    %c0_1 = arith.constant 0 : index
    %3 = vector.load %arg2[%c0, %c0_1] : memref<16x32xf32, #tpu.memory_space<vmem>>, vector<16x32xf32>
    %c0_2 = arith.constant 0 : index
    %c0_3 = arith.constant 0 : index
    %4 = vector.load %arg5[%c0_2, %c0_3] : memref<128x32xf32, #tpu.memory_space<vmem>>, vector<128x32xf32>
    %c0_4 = arith.constant 0 : index
    %c0_5 = arith.constant 0 : index
    %5 = vector.load %arg3[%c0_4, %c0_5] : memref<16x1xi32, #tpu.memory_space<vmem>>, vector<16x1xi32>
    %c0_6 = arith.constant 0 : index
    %c0_7 = arith.constant 0 : index
    %6 = vector.load %arg6[%c0_6, %c0_7] : memref<1x128xi32, #tpu.memory_space<vmem>>, vector<1x128xi32>
    %c0_8 = arith.constant 0 : index
    %c0_9 = arith.constant 0 : index
    %7 = vector.load %arg7[%c0_8, %c0_9] : memref<1x128xf32, #tpu.memory_space<vmem>>, vector<1x128xf32>
    %8 = arith.mulf %3, %3 : vector<16x32xf32>
    %cst = arith.constant dense<0.000000e+00> : vector<16xf32>
    %9 = vector.multi_reduction <add>, %8, %cst [1] : vector<16x32xf32> to vector<16xf32>
    %10 = vector.shape_cast %9 : vector<16xf32> to vector<16x1xf32>
    %cst_10 = arith.constant dense<0.000000e+00> : vector<16xf32>
    %11 = vector.multi_reduction <add>, %3, %cst_10 [1] : vector<16x32xf32> to vector<16xf32>
    %12 = vector.shape_cast %11 : vector<16xf32> to vector<16x1xf32>
    %cst_11 = arith.constant 2.000000e-06 : f32
    %13 = vector.broadcast %cst_11 : f32 to vector<16x1xf32>
    %14 = arith.mulf %13, %12 : vector<16x1xf32>
    %15 = arith.addf %10, %14 : vector<16x1xf32>
    %cst_12 = arith.constant 3.200000e-11 : f32
    %16 = vector.broadcast %cst_12 : f32 to vector<16x1xf32>
    %17 = arith.addf %15, %16 : vector<16x1xf32>
    %cst_13 = arith.constant dense<0.000000e+00> : vector<16x128xf32>
    %18 = tpu.matmul %3, %4, %cst_13 {dimension_numbers = #tpu.dot_dimension_numbers<[1], [1], [0], [0], [0, 0, 1, 0], [], []>} : vector<16x32xf32>, vector<128x32xf32>, vector<16x128xf32> -> vector<16x128xf32>
    %19 = vector.broadcast %17 : vector<16x1xf32> to vector<16x128xf32>
    %20 = vector.broadcast %7 : vector<1x128xf32> to vector<16x128xf32>
    %21 = arith.addf %19, %20 : vector<16x128xf32>
    %cst_14 = arith.constant 2.000000e+00 : f32
    %22 = vector.broadcast %cst_14 : f32 to vector<16x128xf32>
    %23 = arith.mulf %22, %18 : vector<16x128xf32>
    %24 = arith.subf %21, %23 : vector<16x128xf32>
    %cst_15 = arith.constant 0.000000e+00 : f32
    %25 = vector.broadcast %cst_15 : f32 to vector<16x128xf32>
    %26 = arith.maximumf %24, %25 : vector<16x128xf32>
    %27 = math.sqrt %26 : vector<16x128xf32>
    %c0_16 = arith.constant 0 : index
    %c0_17 = arith.constant 0 : index
    %28 = vector.load %arg10[%c0_16, %c0_17] : memref<16x1xf32, #tpu.memory_space<vmem>>, vector<16x1xf32>
    %cst_18 = arith.constant dense<0.000000e+00> : vector<16xf32>
    %29 = vector.multi_reduction <add>, %27, %cst_18 [1] : vector<16x128xf32> to vector<16xf32>
    %30 = vector.shape_cast %29 : vector<16xf32> to vector<16x1xf32>
    %31 = arith.addf %28, %30 : vector<16x1xf32>
    %c0_19 = arith.constant 0 : index
    %c0_20 = arith.constant 0 : index
    %32 = vector.load %arg10[%c0_19, %c0_20] : memref<16x1xf32, #tpu.memory_space<vmem>>, vector<16x1xf32>
    tpu.vector_store %arg10[%c0_19, %c0_20], %31 {strides = array<i32>} : memref<16x1xf32, #tpu.memory_space<vmem>>, vector<16x1xf32>,
    %c0_21 = arith.constant 0 : index
    %c0_22 = arith.constant 0 : index
    %33 = vector.load %arg9[%c0_21, %c0_22] : memref<16x1xf32, #tpu.memory_space<vmem>>, vector<16x1xf32>
    %34 = vector.broadcast %5 : vector<16x1xi32> to vector<16x128xi32>
    %35 = vector.broadcast %6 : vector<1x128xi32> to vector<16x128xi32>
    %36 = arith.cmpi eq, %34, %35 : vector<16x128xi32>
    %cst_23 = arith.constant 0.000000e+00 : f32
    %37 = vector.broadcast %cst_23 : f32 to vector<16x128xf32>
    %38 = arith.select %36, %27, %37 : vector<16x128xi1>, vector<16x128xf32>
    %cst_24 = arith.constant dense<0.000000e+00> : vector<16xf32>
    %39 = vector.multi_reduction <add>, %38, %cst_24 [1] : vector<16x128xf32> to vector<16xf32>
    %40 = vector.shape_cast %39 : vector<16xf32> to vector<16x1xf32>
    %41 = arith.addf %33, %40 : vector<16x1xf32>
    %c0_25 = arith.constant 0 : index
    %c0_26 = arith.constant 0 : index
    %42 = vector.load %arg9[%c0_25, %c0_26] : memref<16x1xf32, #tpu.memory_space<vmem>>, vector<16x1xf32>
    tpu.vector_store %arg9[%c0_25, %c0_26], %41 {strides = array<i32>} : memref<16x1xf32, #tpu.memory_space<vmem>>, vector<16x1xf32>,
    %c0_i32_27 = arith.constant 0 : i32
    %43 = arith.cmpi eq, %arg1, %c0_i32_27 : i32
    %44 = arith.extui %43 : i1 to i32
    %c0_i32_28 = arith.constant 0 : i32
    %45 = arith.cmpi ne, %44, %c0_i32_28 : i32
    scf.if %45 {
      %c0_29 = arith.constant 0 : index
      %c0_30 = arith.constant 0 : index
      %46 = vector.load %arg4[%c0_29, %c0_30] : memref<16x1xf32, #tpu.memory_space<vmem>>, vector<16x1xf32>
      %c0_31 = arith.constant 0 : index
      %c0_32 = arith.constant 0 : index
      %47 = vector.load %arg9[%c0_31, %c0_32] : memref<16x1xf32, #tpu.memory_space<vmem>>, vector<16x1xf32>
      %c0_33 = arith.constant 0 : index
      %c0_34 = arith.constant 0 : index
      %48 = vector.load %arg10[%c0_33, %c0_34] : memref<16x1xf32, #tpu.memory_space<vmem>>, vector<16x1xf32>
      %cst_35 = arith.constant 1.000000e+00 : f32
      %49 = vector.broadcast %cst_35 : f32 to vector<16x1xf32>
      %50 = arith.cmpf ogt, %46, %49 : vector<16x1xf32>
      %cst_36 = arith.constant 1.000000e+00 : f32
      %51 = vector.broadcast %cst_36 : f32 to vector<16x1xf32>
      %52 = arith.maximumf %46, %51 : vector<16x1xf32>
      %53 = arith.divf %47, %52 : vector<16x1xf32>
      %cst_37 = arith.constant 0.000000e+00 : f32
      %54 = vector.broadcast %cst_37 : f32 to vector<16x1xf32>
      %55 = arith.select %50, %53, %54 : vector<16x1xi1>, vector<16x1xf32>
      %cst_38 = arith.constant 1.600000e+01 : f32
      %56 = vector.broadcast %cst_38 : f32 to vector<16x1xf32>
      %57 = arith.subf %56, %46 : vector<16x1xf32>
      %cst_39 = arith.constant 0.000000e+00 : f32
      %58 = vector.broadcast %cst_39 : f32 to vector<16x1xf32>
      %59 = arith.cmpf ogt, %57, %58 : vector<16x1xf32>
      %60 = arith.subf %48, %47 : vector<16x1xf32>
      %cst_40 = arith.constant 1.000000e+00 : f32
      %61 = vector.broadcast %cst_40 : f32 to vector<16x1xf32>
      %62 = arith.maximumf %57, %61 : vector<16x1xf32>
      %63 = arith.divf %60, %62 : vector<16x1xf32>
      %cst_41 = arith.constant 0x7F800000 : f32
      %64 = vector.broadcast %cst_41 : f32 to vector<16x1xf32>
      %65 = arith.select %59, %63, %64 : vector<16x1xi1>, vector<16x1xf32>
      %66 = arith.subf %65, %55 : vector<16x1xf32>
      %67 = arith.maximumf %55, %65 : vector<16x1xf32>
      %68 = arith.divf %66, %67 : vector<16x1xf32>
      %c16_i32 = arith.constant 16 : i32
      %69 = arith.muli %arg0, %c16_i32 : i32
      %70 = tpu.iota {dimensions = array<i32: 0>} : vector<16x1xi32>
      %71 = vector.broadcast %69 : i32 to vector<16x1xi32>
      %72 = arith.addi %71, %70 : vector<16x1xi32>
      %c16_i32_42 = arith.constant 16 : i32
      %73 = vector.broadcast %c16_i32_42 : i32 to vector<16x1xi32>
      %74 = arith.cmpi slt, %72, %73 : vector<16x1xi32>
      %cst_43 = arith.constant 1.000000e+00 : f32
      %75 = vector.broadcast %cst_43 : f32 to vector<16x1xf32>
      %76 = arith.addf %75, %68 : vector<16x1xf32>
      %cst_44 = arith.constant 0.000000e+00 : f32
      %77 = vector.broadcast %cst_44 : f32 to vector<16x1xf32>
      %78 = arith.select %74, %76, %77 : vector<16x1xi1>, vector<16x1xf32>
      %79 = vector.shape_cast %78 : vector<16x1xf32> to vector<1x16x1xf32>
      %cst_45 = arith.constant dense<0.000000e+00> : vector<1xf32>
      %80 = vector.multi_reduction <add>, %79, %cst_45 [1, 2] : vector<1x16x1xf32> to vector<1xf32>
      %81 = vector.shape_cast %80 : vector<1xf32> to vector<1x1x1xf32>
      %82 = vector.extract %81[0, 0, 0] : f32 from vector<1x1x1xf32>
      %83 = vector.broadcast %82 : f32 to vector<1x8x128xf32>
      %c0_46 = arith.constant 0 : index
      %c0_47 = arith.constant 0 : index
      %c0_48 = arith.constant 0 : index
      %84 = vector.load %arg8[%c0_46, %c0_47, %c0_48] : memref<1x8x128xf32, #tpu.memory_space<vmem>>, vector<1x8x128xf32>
      tpu.vector_store %arg8[%c0_46, %c0_47, %c0_48], %83 {strides = array<i32>} : memref<1x8x128xf32, #tpu.memory_space<vmem>>, vector<1x8x128xf32>,
    } else {
    }
    return
  }
  func.func @transform_0(%arg0: i32, %arg1: i32) -> (i32, i32) {
    %c0_i32 = arith.constant 0 : i32
    %c0_i32_0 = arith.constant 0 : i32
    return %arg0, %c0_i32 : i32, i32
  }
  func.func @transform_1(%arg0: i32, %arg1: i32) -> (i32, i32) {
    %c0_i32 = arith.constant 0 : i32
    %c0_i32_0 = arith.constant 0 : i32
    return %arg0, %c0_i32 : i32, i32
  }
  func.func @transform_2(%arg0: i32, %arg1: i32) -> (i32, i32) {
    %c0_i32 = arith.constant 0 : i32
    %c0_i32_0 = arith.constant 0 : i32
    return %arg0, %c0_i32 : i32, i32
  }
  func.func @transform_3(%arg0: i32, %arg1: i32) -> (i32, i32) {
    %c0_i32 = arith.constant 0 : i32
    %c0_i32_0 = arith.constant 0 : i32
    return %arg1, %c0_i32 : i32, i32
  }
  func.func @transform_4(%arg0: i32, %arg1: i32) -> (i32, i32) {
    %c0_i32 = arith.constant 0 : i32
    %c0_i32_0 = arith.constant 0 : i32
    return %c0_i32, %arg1 : i32, i32
  }
  func.func @transform_5(%arg0: i32, %arg1: i32) -> (i32, i32) {
    %c0_i32 = arith.constant 0 : i32
    %c0_i32_0 = arith.constant 0 : i32
    return %c0_i32, %arg1 : i32, i32
  }
  func.func @transform_6(%arg0: i32, %arg1: i32) -> (i32, i32, i32) {
    %c0_i32 = arith.constant 0 : i32
    %c0_i32_0 = arith.constant 0 : i32
    %c0_i32_1 = arith.constant 0 : i32
    return %arg0, %c0_i32, %c0_i32_0 : i32, i32, i32
  }
}

</mosaic_0001>

<bundles_post_ra>
// kernel: tpu_custom_call.1
= control target key start
LH: loop header
LB: loop body
LE: loop exit
PB: predicated region body
PF: predicated region fallthrough
CT: control target
= control target key end

     0   :  { %vm57_vm0 = vcmask 261120   ;;  %v518_v6 = vmov 0   ;;  %s694_s0 = inlined_call_operand.vmem [shape: f32[128,32], index: 0, kind: input, shape index: {}]   ;;  %s695_s1 = inlined_call_operand.vmem [shape: s32[16,1], index: 1, kind: input, shape index: {}]   ;;  %s696_s2 = inlined_call_operand.vmem [shape: f32[16,1], index: 2, kind: input, shape index: {}]   ;;  %s697_s3 = inlined_call_operand.vmem [shape: f32[128,32], index: 3, kind: input, shape index: {}]   ;;  %s698_s4 = inlined_call_operand.vmem [shape: s32[1,128], index: 4, kind: input, shape index: {}]   ;;  %s699_s5 = inlined_call_operand.vmem [shape: f32[1,128], index: 5, kind: input, shape index: {}]   ;;  %s700_s6 = inlined_call_operand.hbm [shape: f32[1,8,128], index: 6, kind: output, shape index: {}]  }
   0x1   :  { %v35_v0 = vld [vmem:[%s697_s3] sm:$0xff]  ;;  %v36_v1 = vld [vmem:[%s697_s3 + $0x8] sm:$0xff]  ;;  %v37_v2 = vld [vmem:[%s697_s3 + $0x10] sm:$0xff]  ;;  %477 = vset.pattern.permute.xlu1 %v518_v6  ;;  %476 = vset.pattern.permute.xlu0 %v518_v6 }
   0x2   :  { %v423_v3 = vpack.c.bf16 %v36_v1, %v35_v0  ;;  %vm567_vm1 = vmpackc.low %vm57_vm0, %vm57_vm0  ;;  %v38_v5 = vld [vmem:[%s697_s3 + $0x18] sm:$0xff]  ;;  %v33_v8 = vld [vmem:[%s694_s0] sm:$0xff] }
   0x3   :  { %v429_v7 = vpack.c.bf16 %v38_v5, %v37_v2  ;;  %v39_v9 = vld [vmem:[%s697_s3 + $0x20] sm:$0xff]  ;;  %v40_v10 = vld [vmem:[%s697_s3 + $0x28] sm:$0xff]  ;;  %420 = vmatprep.mubr.msk.f32.mxu0 %vm57_vm0, %v33_v8  ;;  %v64_v12 = vsel %vm57_vm0, %v33_v8, 0.0  ;;  %v55_v13 = vmul.f32 %v33_v8, %v33_v8 }
   0x4   :  { %425 = vmatprep.subr.msk.bf16.mxu0 %vm567_vm1, %v423_v3  ;;  %v34_v11 = vld [vmem:[%s694_s0 + $0x8] sm:$0xff]  ;;  %65 = vadd.xlane.f32.xlu0 %v64_v12 }
   0x5   :  { %428 = vmatpush3.bf16.xpose.msk.msra.mxu0 %vm567_vm1, %v423_v3  ;;  %v56_v14 = vmul.f32 %v34_v11, %v34_v11 }
   0x6   :  { %431 = vmatprep.subr.msk.bf16.mxu0 %vm567_vm1, %v429_v7 }
   0x7   :  { %11 = vsyncpa [#allocation5], 0  ;;  %v58_v15 = vsel %vm57_vm0, %v55_v13, 0.0  ;;  %v67_v16 = vsel %vm57_vm0, %v34_v11, 0.0  ;;  %v435_v17 = vpack.c.bf16 %v40_v10, %v39_v9  ;;  %v61_v18 = vsel %vm57_vm0, %v56_v14, 0.0  ;;  %v41_v19 = vld [vmem:[%s697_s3 + $0x30] sm:$0xff] }
   0x8   :  { %59 = vadd.xlane.f32.xlu1 %v58_v15  ;;  %68 = vadd.xlane.f32.xlu0 %v67_v16  ;;  %v42_v20 = vld [vmem:[%s697_s3 + $0x38] sm:$0xff]  ;;  %v43_v22 = vld [vmem:[%s697_s3 + $0x40] sm:$0xff]  ;;  %v44_v23 = vld [vmem:[%s697_s3 + $0x48] sm:$0xff]  ;;  %vm28_vm8 = vcmask 7168  }
   0x9   :  { %v441_v21 = vpack.c.bf16 %v42_v20, %v41_v19  ;;  %v447_v24 = vpack.c.bf16 %v44_v23, %v43_v22  ;;  %v52_v25 = vld [vmem:[%s695_s1 + $0x8] sm:$0xff]  ;;  %v45_v26 = vld [vmem:[%s697_s3 + $0x50] sm:$0xff]  ;;  %v46_v27 = vld [vmem:[%s697_s3 + $0x58] sm:$0xff] }
   0xa   :  { %v51_v28 = vld [vmem:[%s695_s1] sm:$0xff]  ;;  %v453_v29 = vpack.c.bf16 %v46_v27, %v45_v26  ;;  %v48_v31 = vld [vmem:[%s697_s3 + $0x68] sm:$0xff]  ;;  %v49_v33 = vld [vmem:[%s697_s3 + $0x70] sm:$0xff] }
   0xb   :  { %v47_v30 = vld [vmem:[%s697_s3 + $0x60] sm:$0xff]  ;;  %v50_v34 = vld [vmem:[%s697_s3 + $0x78] sm:$0xff]  ;;  %v272_v12 = vld [vmem:[%s696_s2 + $0x8] sm:$0xff] }
   0xc   :  { %62 = vadd.xlane.f32.xlu1 %v61_v18  ;;  %v459_v32 = vpack.c.bf16 %v48_v31, %v47_v30  ;;  %v465_v35 = vpack.c.bf16 %v50_v34, %v49_v33  ;;  %v368_v45 = vld [vmem:[%s699_s5] ss:$0 sm:$0xff]  ;;  %v288_v18 = vsub.f32 16.0, %v272_v12  ;;  %v280_v22 = vmax.f32 %v272_v12, 1.0 }
   0xd   :  { %434 = vmatpush3.bf16.xpose.msk.msra.mxu0 %vm567_vm1, %v429_v7  ;;  %v369_v62 = vld [vmem:[%s698_s4] ss:$0 sm:$0xff]  ;;  %v519_v7 = vmov 0.0   ;;  %vm278_vm11 = vcmp.gt.f32.partialorder %v272_v12, 1.0 }
   0xe   :  { %437 = vmatprep.subr.msk.bf16.mxu0 %vm567_vm1, %v435_v17  ;;  %32 = vst.msk [vmem:[#allocation3 + $0x8] sm:$0xff] %vm28_vm8, %v519_v7  ;;  %29 = vst.msk [vmem:[#allocation2] sm:$0xff] %vm28_vm8, %v519_v7  ;;  %v271_v9 = vld [vmem:[%s696_s2] sm:$0xff]  ;;  %vm290_vm12 = vcmp.gt.f32.partialorder %v288_v18, 0.0  ;;  %s520_s2 = smov [#allocation4]  }
   0xf   :  { %30 = vst.msk [vmem:[#allocation2 + $0x8] sm:$0xff] %vm28_vm8, %v519_v7  ;;  %31 = vst.msk [vmem:[#allocation3] sm:$0xff] %vm28_vm8, %v519_v7  ;;  %v287_v10 = vsub.f32 16.0, %v271_v9  ;;  %v279_v14 = vmax.f32 %v271_v9, 1.0  ;;  %vm277_vm9 = vcmp.gt.f32.partialorder %v271_v9, 1.0  ;;  %s342_s15 = sshll.u32 %s520_s2, 4  ;;  %s343_s15 = int_to_ptr.vmem [resolvable:$true] %s342_s15 }
  0x10   :  { %s494_s17 = scalar_lea.vmem %s343_s15, 128  ;;  %p499_p1 = scmp.lt.s32.totalorder %s343_s15, %s343_s15 }
  0x11   :  { %v293_v19 = vmax.f32 %v287_v10, 1.0  ;;  %vm289_vm10 = vcmp.gt.f32.partialorder %v287_v10, 0.0  ;;  %p495_p0 = scmp.ne.s32.totalorder %s343_s15, %s494_s17  ;;  %p500_p2 = scmp.lt.s32.totalorder %s494_s17, %s494_s17 }
  0x13   :  { %p501_p3 = por %p500_p2, %p499_p1 }
  0x15   :  { %440 = vmatpush3.bf16.xpose.msk.msra.mxu0 %vm567_vm1, %v435_v17  ;;  %p502_p4 = pnand %p501_p3, %p495_p0 }
  0x16   :  { %443 = vmatprep.subr.msk.bf16.mxu0 %vm567_vm1, %v441_v21  ;;  %v233_v13 = vld [vmem:[#allocation3] sm:$0xff]  ;;  %v245_v26 = vld [vmem:[#allocation2 + $0x8] sm:$0xff] }
  0x1d   :  { %446 = vmatpush3.bf16.xpose.msk.msra.mxu0 %vm567_vm1, %v441_v21  ;;  %250 = vperm.xlu1 %477, %v52_v25   ;;  %v244_v21 = vld [vmem:[#allocation2] sm:$0xff] }
  0x1e   :  { %449 = vmatprep.subr.msk.bf16.mxu0 %vm567_vm1, %v447_v24  ;;  %247 = vperm.xlu0 %476, %v51_v28  }
  0x25   :  { %452 = vmatpush3.bf16.xpose.msk.msra.mxu0 %vm567_vm1, %v447_v24  ;;  %v294_v24 = vmax.f32 %v288_v18, 1.0 }
  0x26   :  { %455 = vmatprep.subr.msk.bf16.mxu0 %vm567_vm1, %v453_v29 }
  0x2d   :  { %458 = vmatpush3.bf16.xpose.msk.msra.mxu0 %vm567_vm1, %v453_v29 }
  0x2e   :  { %461 = vmatprep.subr.msk.bf16.mxu0 %vm567_vm1, %v459_v32 }
  0x35   :  { %464 = vmatpush3.bf16.xpose.msk.msra.mxu0 %vm567_vm1, %v459_v32 }
  0x36   :  { %467 = vmatprep.subr.msk.bf16.mxu0 %vm567_vm1, %v465_v35 }
  0x3d   :  { %470 = vmatpush3.bf16.xpose.msk.msra.mxu0 %vm567_vm1, %v465_v35 }
  0x44   :  { %421 = vmatmul.mubr.msk.f32.vlgmr.msra.gmra.mrb[0].mxu0 %vm57_vm0, %v34_v11  ;;  %v234_v11 = vld [vmem:[#allocation3 + $0x8] sm:$0xff] }
  0x91   :  { %v66_v36 = vpop.xlane.xlu0 %65 }
  0x92   :  { %v70_v40 = vmul.f32 2e-06, %v66_v36 }
  0x95   :  { %v60_v37 = vpop.xlane.xlu1 %59  ;;  %v69_v38 = vpop.xlane.xlu0 %68 }
  0x96   :  { %v71_v39 = vmul.f32 2e-06, %v69_v38  ;;  %v72_v43 = vadd.f32 %v70_v40, %v60_v37 }
  0x98   :  { %v74_v46 = vadd.f32 3.2e-11, %v72_v43 }
  0x99   :  { %v63_v41 = vpop.xlane.xlu1 %62 }
  0x9a   :  { %v73_v42 = vadd.f32 %v71_v39, %v63_v41  ;;  %v211_v48 = vadd.f32 %v368_v45, %v74_v46 }
  0x9c   :  { %v75_v44 = vadd.f32 3.2e-11, %v73_v42 }
  0x9d   :  { %v248_v63 = vpop.permute.xlu0 %247  ;;  %v251_v5 = vpop.permute.xlu1 %250 }
  0x9e   :  { %v212_v47 = vadd.f32 %v368_v45, %v75_v44  ;;  %vm256_vm6 = vcmp.eq.s32.totalorder %v248_v63, %v369_v62  ;;  %vm257_vm7 = vcmp.eq.s32.totalorder %v251_v5, %v369_v62 }
 0x117   :  { %v422_v49 = vpop.f32.mrb[0].mxu0 }
 0x118   :  { %v214_v50 = vmul.f32 2.0, %v422_v49  ;;  %v196_v51 = vpop.f32.mrb[1].mxu0 }
 0x119   :  { %v213_v52 = vmul.f32 2.0, %v196_v51 }
 0x11a   :  { %v216_v53 = vsub.f32 %v212_v47, %v214_v50 }
 0x11b   :  { %v215_v54 = vsub.f32 %v211_v48, %v213_v52 }
 0x11c   :  { %v218_v55 = vmax.f32 %v216_v53, 0.0 }
 0x11d   :  { %v217_v56 = vmax.f32 %v215_v54, 0.0 }
 0x11e   :  { %478 = vrsqrt.f32 %v218_v55  ;;  %vm228_vm2 = vcmp.eq.f32.partialorder %v218_v55, inf  ;;  %v231_v60 = vand.u32 2147483648, %v218_v55  ;;  %vm230_vm3 = vcmp.eq.f32.partialorder %v218_v55, 0.0 }
 0x11f   :  { %480 = vrsqrt.f32 %v217_v56  ;;  %vm221_vm4 = vcmp.eq.f32.partialorder %v217_v56, inf  ;;  %v224_v1 = vand.u32 2147483648, %v217_v56  ;;  %vm223_vm5 = vcmp.eq.f32.partialorder %v217_v56, 0.0 }
 0x120   :  { %482 = vrcp.f32 %v279_v14 }
 0x121   :  { %484 = vrcp.f32 %v293_v19 }
 0x122   :  { %486 = vrcp.f32 %v280_v22 }
 0x123   :  { %488 = vrcp.f32 %v294_v24 }
 0x128   :  { %v479_v57 = vpop.eup %478 }
 0x129   :  { %v481_v58 = vpop.eup %480  ;;  %v227_v59 = vmul.f32 %v479_v57, %v218_v55 }
 0x12a   :  { %v220_v61 = vmul.f32 %v481_v58, %v217_v56  ;;  %v483_v29 = vpop.eup %482 }
 0x12b   :  { %v229_v0 = vsel %vm228_vm2, %v218_v55, %v227_v59  ;;  %v485_v30 = vpop.eup %484 }
 0x12c   :  { %v232_v2 = vsel %vm230_vm3, %v231_v60, %v229_v0  ;;  %v222_v3 = vsel %vm221_vm4, %v217_v56, %v220_v61  ;;  %v487_v35 = vpop.eup %486 }
 0x12d   :  { %237 = vadd.xlane.f32.xlu0 %v232_v2  ;;  %v225_v4 = vsel %vm223_vm5, %v224_v1, %v222_v3  ;;  %v259_v8 = vsel %vm257_vm7, %v232_v2, 0.0  ;;  %v489_v37 = vpop.eup %488 }
 0x12e   :  { %235 = vadd.xlane.f32.xlu1 %v225_v4  ;;  %v258_v6 = vsel %vm256_vm6, %v225_v4, 0.0 }
 0x132   :  { %260 = vadd.xlane.f32.xlu1 %v258_v6 }
 0x136   :  { %262 = vadd.xlane.f32.xlu1 %v259_v8 }
 0x1ba   :  { %v238_v15 = vpop.xlane.xlu0 %237 }
 0x1bb   :  { %v240_v16 = vadd.f32 %v238_v15, %v234_v11  ;;  %v236_v17 = vpop.xlane.xlu1 %235 }
 0x1bc   :  { %v239_v20 = vadd.f32 %v236_v17, %v233_v13 }
 0x1bd   :  { %243 = vst.msk [vmem:[#allocation3 + $0x8] sm:$0xff] %vm28_vm8, %v240_v16 }
 0x1be   :  { %242 = vst.msk [vmem:[#allocation3] sm:$0xff] %vm28_vm8, %v239_v20 }
 0x1bf   :  { %v261_v23 = vpop.xlane.xlu1 %260 }
 0x1c0   :  { %v264_v25 = vadd.f32 %v261_v23, %v244_v21 }
 0x1c2   :  { %266 = vst.msk [vmem:[#allocation2] sm:$0xff] %vm28_vm8, %v264_v25 }
 0x1c3   :  { %v263_v27 = vpop.xlane.xlu1 %262 }
 0x1c4   :  { %v265_v28 = vadd.f32 %v263_v27, %v245_v26  ;;  %v276_v39 = vld [vmem:[#allocation3 + $0x8] sm:$0xff] }
 0x1c5   :  { %v275_v32 = vld [vmem:[#allocation3] sm:$0xff] }
 0x1c6   :  { %267 = vst.msk [vmem:[#allocation2 + $0x8] sm:$0xff] %vm28_vm8, %v265_v28 }
 0x1c9   :  { %v273_v31 = vld [vmem:[#allocation2] sm:$0xff] }
 0x1ca   :  { %v282_v33 = vmul.f32 %v483_v29, %v273_v31  ;;  %v291_v34 = vsub.f32 %v275_v32, %v273_v31 }
 0x1cc   :  { %v296_v36 = vmul.f32 %v485_v30, %v291_v34  ;;  %v285_v41 = vsel %vm277_vm9, %v282_v33, 0.0 }
 0x1cd   :  { %v274_v38 = vld [vmem:[#allocation2 + $0x8] sm:$0xff] }
 0x1ce   :  { %v284_v40 = vmul.f32 %v487_v35, %v274_v38  ;;  %v292_v42 = vsub.f32 %v276_v39, %v274_v38  ;;  %v299_v43 = vsel %vm289_vm10, %v296_v36, inf }
 0x1cf   :  { %v303_v44 = vmax.f32 %v285_v41, %v299_v43  ;;  %v301_v49 = vsub.f32 %v299_v43, %v285_v41 }
 0x1d0   :  { %v298_v45 = vmul.f32 %v489_v37, %v292_v42  ;;  %v286_v46 = vsel %vm278_vm11, %v284_v40, 0.0 }
 0x1d1   :  { %490 = vrcp.f32 %v303_v44 }
 0x1d2   :  { %v300_v47 = vsel %vm290_vm12, %v298_v45, inf }
 0x1d3   :  { %v304_v48 = vmax.f32 %v286_v46, %v300_v47  ;;  %v302_v52 = vsub.f32 %v300_v47, %v286_v46 }
 0x1d5   :  { %492 = vrcp.f32 %v304_v48 }
 0x1db   :  { %v491_v50 = vpop.eup %490 }
 0x1dc   :  { %v306_v51 = vmul.f32 %v491_v50, %v301_v49 }
 0x1de   :  { %v318_v55 = vadd.f32 1.0, %v306_v51 }
 0x1df   :  { %v493_v53 = vpop.eup %492 }
 0x1e0   :  { %v308_v54 = vmul.f32 %v493_v53, %v302_v52  ;;  %v322_v57 = vsel %vm28_vm8, %v318_v55, 0.0 }
 0x1e2   :  { %v319_v56 = vadd.f32 1.0, %v308_v54 }
 0x1e4   :  { %v323_v58 = vsel %vm28_vm8, %v319_v56, 0.0 }
 0x1e5   :  { %v324_v59 = vadd.f32 %v323_v58, %v322_v57 }
 0x1e7   :  { %325 = vadd.xlane.f32.xlu1 %v324_v59 }
 0x274   :  { %v326_v60 = vpop.xlane.xlu1 %325 }
 0x275   :  { %v327_v61 = vrot.slane %v326_v60, 4 }
 0x277   :  { %v328_v62 = vadd.f32 %v327_v61, %v326_v60 }
 0x279   :  { %v329_v63 = vrot.slane %v328_v62, 2 }
 0x27b   :  { %v330_v0 = vadd.f32 %v329_v63, %v328_v62 }
 0x27d   :  { %v331_v1 = vrot.slane %v330_v0, 1 }
 0x27f   :  { %v332_v2 = vadd.f32 %v331_v1, %v330_v0 }
 0x281   :  { %471 = vpush %v332_v2 }
 0x2b2   :  { %s472_s16 = spop %471 }
 0x2b3   :  { %v334_v3 = vstv %s472_s16 }
 0x2b4   :  { %335 = vst [vmem:[#allocation4] sm:$0xff] %v334_v3 }
 0x2b5   :  { %505 = shalt.err (!%p502_p4)
}
 0x2b6   :  { %s506_s20 = scalar_lea.hbm %s700_s6, 128 }
 0x2b7   :  { %p507_p5 = scmp.ne.s32.totalorder %s700_s6, %s506_s20  ;;  %p510_p6 = scmp.lt.u32.totalorder %s506_s20, %s700_s6 }
 0x2b9   :  { %p512_p7 = pnand %p510_p6, %p507_p5 }
 0x2bb   :  { %515 = shalt.err (!%p512_p7)
}
 0x2bc   :  { %345 = dma.vmem_to_hbm [thread:$0]  %s343_s15, 128, %s700_s6, [#allocation5]  }
 0x2bd   :  { %516 = dma.done.wait [#allocation5], 128  }
 0x2be   :  { %517 = vsyncadd [#allocation5], 4294967168 }
 0x2bf   :  { %349 = vsyncpa [#allocation5], 1 }

</bundles_post_ra>
